<compile_context>
chip_gen: v7x
topology: tpu7x:2x2x1
jax: 0.10.0
libtpu: 0.0.40
codegen_flags: <defaults>
</compile_context>

<pallas_src>
import jax
import jax.numpy as jnp
from jax.experimental import pallas as pl
from jax.experimental.pallas import tpu as pltpu


_NEG_PAD = -1e30  # bias value for padded output columns -> exp() underflows to 0


def _round_up(x, m):
    return ((x + m - 1) // m) * m


def _categorical_kernel(x_ref, w_ref, b_ref, logits_ref, probs_ref):
    # x_ref:      (TB, in_dim)    f32  (cast to bf16 here -> no wrapper cast pass)
    # w_ref:      (in_dim, out_p) bf16 (out_p = out_dim padded to 128*k, pad cols = 0)
    # b_ref:      (1, out_p)      f32  (padded columns = -1e30)
    # logits_ref: (TB, out_p)     f32  -> normalized logits (logits - logsumexp)
    # probs_ref:  (TB, out_p)     f32 or bf16 -> softmax(logits)
    x = x_ref[...].astype(jnp.bfloat16)  # VPU cast; MXU takes bf16, f32 accumulate
    logits = jnp.dot(x, w_ref[...], preferred_element_type=jnp.float32) + b_ref[...]

    # Numerically-stable softmax / log-normalization (what OneHotCategorical
    # does with `logits=`).  Padded columns have logits ~ -1e30, so their
    # exp() is exactly 0 and they do not perturb max/sum.  `logits` is dead
    # after `shifted`, reducing live f32 tiles.
    m = jnp.max(logits, axis=-1, keepdims=True)
    shifted = logits - m
    e = jnp.exp(shifted)
    s = jnp.sum(e, axis=-1, keepdims=True)

    # normalized logits == logits - (m + log(s)) == shifted - log(s)
    logits_ref[...] = shifted - jnp.log(s)

    # Exact per-row reciprocal (one divide per (TB,1) row vector).  The old
    # pl.reciprocal(approx=True) path had ~4e-3 relative error and failed the
    # 1e-4 probs check.
    inv = 1.0 / s
    probs_ref[...] = (e * inv).astype(probs_ref.dtype)


def prepare_categorical_params(weight, bias):
    """Prepare (once, e.g. at module init) the kernel-side weight/bias.

    weight: (in_dim, out_dim)  # transposed PyTorch Linear weight
    bias:   (out_dim,)
    Returns:
      w_p: (in_dim, out_p) bf16, out_p = round_up(out_dim, 128), padded cols 0
      b_p: (1, out_p)      f32, padded cols = -1e30 (softmax-neutral)
    """
    in_dim, out_dim = weight.shape
    out_p = _round_up(max(out_dim, 128), 128)
    w_p = weight.astype(jnp.bfloat16)
    b_p = bias.reshape(1, out_dim).astype(jnp.float32)
    if out_p != out_dim:
        w_p = jnp.pad(w_p, ((0, 0), (0, out_p - out_dim)))
        b_p = jnp.pad(b_p, ((0, 0), (0, out_p - out_dim)),
                      constant_values=_NEG_PAD)
    return w_p, b_p


def _vmem_budget_and_limit():
    """Generation-aware VMEM budget (bytes for per-step working set, limit)."""
    cap = None
    try:
        cap = getattr(pltpu.get_tpu_info(), "vmem_capacity_bytes", None)
    except Exception:
        cap = None
    if not cap:
        cap = 64 * 1024 * 1024  # conservative fallback = v7x per-TC VMEM
    limit = min(int(cap * 0.75), 100 * 1024 * 1024)
    budget = limit // 2
    return budget, limit


def _step_vmem_bytes(tile_b, in_dim, out_p, probs_itemsize):
    x_bytes = tile_b * in_dim * 4           # f32 x tile (bf16 cast is in-kernel)
    w_bytes = in_dim * out_p * 2            # bf16 weight block (grid-invariant)
    b_bytes = out_p * 4                     # f32 bias block (grid-invariant)
    logit_bytes = tile_b * out_p * 4        # f32 normalized-logits tile
    probs_bytes = tile_b * out_p * probs_itemsize
    temps = 2 * tile_b * out_p * 4          # live f32 temporaries (shifted, e)
    # inputs/outputs are double-buffered by the BlockSpec pipeline
    return 2 * (x_bytes + w_bytes + b_bytes + logit_bytes + probs_bytes) + temps


def categorical_forward(x, w_p, b_p, out_dim, *, tile_b=None,
                        probs_dtype=jnp.float32):
    """Returns (normalized_logits [f32], probs [probs_dtype]), both (B, out_dim).

    x:   (B, in_dim) float
    w_p, b_p: outputs of prepare_categorical_params()
    """
    B, in_dim = x.shape
    in_dim_w, out_p = w_p.shape
    assert in_dim_w == in_dim

    x = x.astype(jnp.float32)
    probs_itemsize = jnp.dtype(probs_dtype).itemsize
    vmem_budget, vmem_limit = _vmem_budget_and_limit()

    if tile_b is None:
        # Aim for >= 2 grid steps when the batch allows it (feeds both v7x
        # TensorCores via the "parallel" axis); cap per-step tile size.
        tile_b = 16 if B <= 16 else min(_round_up(pl.cdiv(B, 2), 16), 1024)
    tile_b = max(16, min(_round_up(tile_b, 16), _round_up(B, 16)))
    while (tile_b > 16 and
           _step_vmem_bytes(tile_b, in_dim, out_p, probs_itemsize) > vmem_budget):
        tile_b = max(16, _round_up(tile_b // 2, 16))

    # No batch padding: ragged last block is masked by Pallas (its rows are
    # computed on garbage but never written back to HBM).
    grid = (pl.cdiv(B, tile_b),)

    out_shapes = (
        jax.ShapeDtypeStruct((B, out_p), jnp.float32),
        jax.ShapeDtypeStruct((B, out_p), probs_dtype),
    )

    norm_logits_p, probs_p = pl.pallas_call(
        _categorical_kernel,
        out_shape=out_shapes,
        grid_spec=pltpu.PrefetchScalarGridSpec(
            num_scalar_prefetch=0,
            grid=grid,
            in_specs=[
                pl.BlockSpec((tile_b, in_dim), lambda i: (i, 0)),
                pl.BlockSpec((in_dim, out_p), lambda i: (0, 0)),  # grid-invariant
                pl.BlockSpec((1, out_p), lambda i: (0, 0)),       # grid-invariant
            ],
            out_specs=[
                pl.BlockSpec((tile_b, out_p), lambda i: (i, 0)),
                pl.BlockSpec((tile_b, out_p), lambda i: (i, 0)),
            ],
        ),
        compiler_params=pltpu.CompilerParams(
            dimension_semantics=("parallel",),
            vmem_limit_bytes=vmem_limit,
        ),
    )(x, w_p, b_p)

    # Strip only the lane padding (no batch slice needed).
    if out_p != out_dim:
        norm_logits_p = norm_logits_p[:, :out_dim]
        probs_p = probs_p[:, :out_dim]
    return norm_logits_p, probs_p


if __name__ == "__main__":
    # Small shapes consistent with the module: Linear(in_dim=32, out_dim=16).
    B, in_dim, out_dim = 16, 32, 16

    key = jax.random.PRNGKey(0)
    kx, kw, kb = jax.random.split(key, 3)

    # Deterministic "PyTorch-like" Linear init: U(-1/sqrt(in_dim), 1/sqrt(in_dim)).
    bound = 1.0 / jnp.sqrt(jnp.float32(in_dim))
    # PyTorch weight is (out_dim, in_dim); store transposed for the kernel layout.
    w_pt = jax.random.uniform(kw, (out_dim, in_dim), jnp.float32, -bound, bound)
    weight = w_pt.T  # (in_dim, out_dim)
    bias = jax.random.uniform(kb, (out_dim,), jnp.float32, -bound, bound)

    x = jax.random.normal(kx, (B, in_dim), jnp.float32)

    # Prepare (cast/pad) parameters once, outside the per-forward path.
    w_p, b_p = prepare_categorical_params(weight, bias)

    # Primary path: f32 probs, tight accuracy check.
    norm_logits, probs = categorical_forward(x, w_p, b_p, out_dim)
    norm_logits = jax.block_until_ready(norm_logits)
    probs = jax.block_until_ready(probs)

    # Reference in plain JAX, using the same bf16 MXU operands / f32 accumulate
    # (same semantics as OneHotCategorical(logits=...)).
    ref_logits = jnp.dot(x.astype(jnp.bfloat16), weight.astype(jnp.bfloat16),
                         preferred_element_type=jnp.float32) + bias
    ref_m = jnp.max(ref_logits, axis=-1, keepdims=True)
    ref_lse = ref_m + jnp.log(jnp.sum(jnp.exp(ref_logits - ref_m),
                                      axis=-1, keepdims=True))
    ref_norm = ref_logits - ref_lse
    ref_probs = jax.nn.softmax(ref_logits, axis=-1)

    assert norm_logits.shape == (B, out_dim) and probs.shape == (B, out_dim)
    assert jnp.allclose(norm_logits, ref_norm, atol=1e-4, rtol=1e-4)
    assert jnp.allclose(probs, ref_probs, atol=1e-4, rtol=1e-4)
    assert jnp.allclose(jnp.sum(probs, axis=-1), 1.0, atol=1e-4)

    # Bandwidth-optimized path: bf16 probs output (~25% less HBM write traffic).
    _, probs_bf16 = categorical_forward(x, w_p, b_p, out_dim,
                                        probs_dtype=jnp.bfloat16)
    probs_bf16 = jax.block_until_ready(probs_bf16)
    assert probs_bf16.dtype == jnp.bfloat16
    assert jnp.allclose(probs_bf16.astype(jnp.float32), ref_probs, atol=1e-2)

    # Sanity against pure-f32 math (loose tolerance: bf16 operand rounding).
    ref_probs_f32 = jax.nn.softmax(x @ weight + bias, axis=-1)
    assert jnp.allclose(probs, ref_probs_f32, atol=3e-2)

    # TODO(synk): OneHotCategorical.sample()/log_prob() (stochastic sampling) is
    # left to the caller; the kernel produces the distribution parameters.
    print("KERNEL_OK")
</pallas_src>

<mosaic_0001>
module attributes {stable_mosaic.version = 11 : i64} {
  func.func @_categorical_kernel(%arg0: i32, %arg1: memref<16x32xf32, #tpu.memory_space<vmem>>, %arg2: memref<32x128xbf16, #tpu.memory_space<vmem>>, %arg3: memref<1x128xf32, #tpu.memory_space<vmem>>, %arg4: memref<16x128xf32, #tpu.memory_space<vmem>>, %arg5: memref<16x128xf32, #tpu.memory_space<vmem>>) attributes {dimension_semantics = [#tpu.dimension_semantics<parallel>], iteration_bounds = array<i64: 1>, scalar_prefetch = 0 : i64, scratch_operands = 0 : i64, tpu.core_type = #tpu.core_type<tc>, window_params = [{transform_indices = @transform_0, window_bounds = array<i64: 16, 32>}, {pipeline_mode = #tpu.pipeline_mode<synchronous>, transform_indices = @transform_1, window_bounds = array<i64: 32, 128>}, {pipeline_mode = #tpu.pipeline_mode<synchronous>, transform_indices = @transform_2, window_bounds = array<i64: 1, 128>}, {transform_indices = @transform_3, window_bounds = array<i64: 16, 128>}, {transform_indices = @transform_4, window_bounds = array<i64: 16, 128>}]} {
    %c0 = arith.constant 0 : index
    %c0_0 = arith.constant 0 : index
    %0 = vector.load %arg1[%c0, %c0_0] : memref<16x32xf32, #tpu.memory_space<vmem>>, vector<16x32xf32>
    %1 = arith.truncf %0 : vector<16x32xf32> to vector<16x32xbf16>
    %c0_1 = arith.constant 0 : index
    %c0_2 = arith.constant 0 : index
    %2 = vector.load %arg2[%c0_1, %c0_2] : memref<32x128xbf16, #tpu.memory_space<vmem>>, vector<32x128xbf16>
    %cst = arith.constant dense<0.000000e+00> : vector<16x128xf32>
    %3 = tpu.matmul %1, %2, %cst {dimension_numbers = #tpu.dot_dimension_numbers<[1], [0], [0], [1], [0, 0, 1, 1], [], []>} : vector<16x32xbf16>, vector<32x128xbf16>, vector<16x128xf32> -> vector<16x128xf32>
    %c0_3 = arith.constant 0 : index
    %c0_4 = arith.constant 0 : index
    %4 = vector.load %arg3[%c0_3, %c0_4] : memref<1x128xf32, #tpu.memory_space<vmem>>, vector<1x128xf32>
    %5 = vector.broadcast %4 : vector<1x128xf32> to vector<16x128xf32>
    %6 = arith.addf %3, %5 : vector<16x128xf32>
    %cst_5 = arith.constant dense<0xFF800000> : vector<16xf32>
    %7 = vector.multi_reduction <maximumf>, %6, %cst_5 [1] : vector<16x128xf32> to vector<16xf32>
    %8 = vector.shape_cast %7 : vector<16xf32> to vector<16x1xf32>
    %9 = vector.broadcast %8 : vector<16x1xf32> to vector<16x128xf32>
    %10 = arith.subf %6, %9 : vector<16x128xf32>
    %11 = math.exp %10 : vector<16x128xf32>
    %cst_6 = arith.constant dense<0.000000e+00> : vector<16xf32>
    %12 = vector.multi_reduction <add>, %11, %cst_6 [1] : vector<16x128xf32> to vector<16xf32>
    %13 = vector.shape_cast %12 : vector<16xf32> to vector<16x1xf32>
    %14 = math.log %13 : vector<16x1xf32>
    %15 = vector.broadcast %14 : vector<16x1xf32> to vector<16x128xf32>
    %16 = arith.subf %10, %15 : vector<16x128xf32>
    %c0_7 = arith.constant 0 : index
    %c0_8 = arith.constant 0 : index
    %17 = vector.load %arg4[%c0_7, %c0_8] : memref<16x128xf32, #tpu.memory_space<vmem>>, vector<16x128xf32>
    tpu.vector_store %arg4[%c0_7, %c0_8], %16 {strides = array<i32>} : memref<16x128xf32, #tpu.memory_space<vmem>>, vector<16x128xf32>,
    %cst_9 = arith.constant 1.000000e+00 : f32
    %18 = vector.broadcast %cst_9 : f32 to vector<16x1xf32>
    %19 = arith.divf %18, %13 : vector<16x1xf32>
    %20 = vector.broadcast %19 : vector<16x1xf32> to vector<16x128xf32>
    %21 = arith.mulf %11, %20 : vector<16x128xf32>
    %c0_10 = arith.constant 0 : index
    %c0_11 = arith.constant 0 : index
    %22 = vector.load %arg5[%c0_10, %c0_11] : memref<16x128xf32, #tpu.memory_space<vmem>>, vector<16x128xf32>
    tpu.vector_store %arg5[%c0_10, %c0_11], %21 {strides = array<i32>} : memref<16x128xf32, #tpu.memory_space<vmem>>, vector<16x128xf32>,
    return
  }
  func.func @transform_0(%arg0: i32) -> (i32, i32) {
    %c0_i32 = arith.constant 0 : i32
    %c0_i32_0 = arith.constant 0 : i32
    return %arg0, %c0_i32 : i32, i32
  }
  func.func @transform_1(%arg0: i32) -> (i32, i32) {
    %c0_i32 = arith.constant 0 : i32
    %c0_i32_0 = arith.constant 0 : i32
    %c0_i32_1 = arith.constant 0 : i32
    return %c0_i32, %c0_i32_0 : i32, i32
  }
  func.func @transform_2(%arg0: i32) -> (i32, i32) {
    %c0_i32 = arith.constant 0 : i32
    %c0_i32_0 = arith.constant 0 : i32
    %c0_i32_1 = arith.constant 0 : i32
    return %c0_i32, %c0_i32_0 : i32, i32
  }
  func.func @transform_3(%arg0: i32) -> (i32, i32) {
    %c0_i32 = arith.constant 0 : i32
    %c0_i32_0 = arith.constant 0 : i32
    return %arg0, %c0_i32 : i32, i32
  }
  func.func @transform_4(%arg0: i32) -> (i32, i32) {
    %c0_i32 = arith.constant 0 : i32
    %c0_i32_0 = arith.constant 0 : i32
    return %arg0, %c0_i32 : i32, i32
  }
}

</mosaic_0001>

<bundles_post_ra>
// kernel: tpu_custom_call.1
= control target key start
LH: loop header
LB: loop body
LE: loop exit
PB: predicated region body
PF: predicated region fallthrough
CT: control target
= control target key end

     0   :  { %10 = vsyncpa [#allocation3], 0  ;;  %s419_s0 = inlined_call_operand.hbm [shape: f32[16,32], index: 0, kind: input, shape index: {}]   ;;  %s420_s1 = inlined_call_operand.hbm [shape: bf16[32,128], index: 1, kind: input, shape index: {}]   ;;  %s421_s2 = inlined_call_operand.vmem [shape: f32[1,128], index: 2, kind: input, shape index: {}]   ;;  %s422_s3 = inlined_call_operand.hbm [shape: f32[16,128], index: 3, kind: output, shape index: {0}]   ;;  %s423_s4 = inlined_call_operand.hbm [shape: f32[16,128], index: 4, kind: output, shape index: {1}]  }
   0x1   :  { %11 = vsyncpa [#allocation6], 0 }
   0x2   :  { %12 = vsyncpa [#allocation4], 0 }
   0x3   :  { %13 = vsyncpa [#allocation9], 0  ;;  %s317_s15 = smov [#allocation2]   ;;  %s221_s19 = scalar_lea.hbm %s419_s0, 256 }
   0x4   :  { %s19_s16 = sshll.u32 %s317_s15, 4  ;;  %p222_p0 = scmp.ne.s32.totalorder %s419_s0, %s221_s19  ;;  %s20_s16 = int_to_ptr.vmem [resolvable:$true] %s19_s16 }
   0x5   :  { %p225_p1 = scmp.lt.u32.totalorder %s221_s19, %s419_s0 }
   0x7   :  { %p227_p2 = pnand %p225_p1, %p222_p0 }
   0x9   :  { %230 = shalt.err (!%p227_p2)
}
   0xa   :  { %s231_s24 = scalar_lea.vmem %s20_s16, 256  ;;  %p236_p4 = scmp.lt.s32.totalorder %s20_s16, %s20_s16 }
   0xb   :  { %p232_p3 = scmp.ne.s32.totalorder %s20_s16, %s231_s24  ;;  %p237_p5 = scmp.lt.s32.totalorder %s231_s24, %s231_s24 }
   0xd   :  { %p238_p6 = por %p237_p5, %p236_p4 }
   0xf   :  { %p239_p7 = pnand %p238_p6, %p232_p3 }
  0x11   :  { %242 = shalt.err (!%p239_p7)
}
  0x12   :  { %s318_s25 = smov 128   ;;  %s319_s26 = smov 8  }
  0x13   :  { %25 = dma.hbm_to_vmem [thread:$0]  %s419_s0, 256, %s20_s16, [#allocation3], %s318_s25, %s318_s25, %s319_s26  }
  0x14   :  { %s320_s29 = smov [#allocation5]   ;;  %s243_s7 = scalar_lea.hbm %s420_s1, 256 }
  0x15   :  { %s31_s30 = sshll.u32 %s320_s29, 4  ;;  %p244_p8 = scmp.ne.s32.totalorder %s420_s1, %s243_s7  ;;  %s32_s30 = int_to_ptr.vmem [resolvable:$true] %s31_s30 }
  0x16   :  { %p247_p9 = scmp.lt.u32.totalorder %s243_s7, %s420_s1 }
  0x18   :  { %p249_p10 = pnand %p247_p9, %p244_p8 }
  0x1a   :  { %252 = shalt.err (!%p249_p10)
}
  0x1b   :  { %s253_s12 = scalar_lea.vmem %s32_s30, 256  ;;  %p258_p12 = scmp.lt.s32.totalorder %s32_s30, %s32_s30 }
  0x1c   :  { %p254_p11 = scmp.ne.s32.totalorder %s32_s30, %s253_s12  ;;  %p259_p13 = scmp.lt.s32.totalorder %s253_s12, %s253_s12 }
  0x1e   :  { %p260_p0 = por %p259_p13, %p258_p12 }
  0x20   :  { %p261_p1 = pnand %p260_p0, %p254_p11 }
  0x22   :  { %264 = shalt.err (!%p261_p1)
}
  0x23   :  { %s321_s0 = smov 64   ;;  %s322_s13 = smov 4  }
  0x24   :  { %37 = dma.hbm_to_vmem [thread:$0]  %s420_s1, 256, %s32_s30, [#allocation6], %s321_s0, %s321_s0, %s322_s13  }
  0x25   :  { %309 = dma.done.wait [#allocation3], 256  }
  0x26   :  { %310 = vsyncadd [#allocation3], 4294967040 }
  0x27   :  { %311 = dma.done.wait [#allocation6], 256  }
  0x28   :  { %312 = vsyncadd [#allocation6], 4294967040  ;;  %v323_v0 = vmov 0.0   ;;  %vm324_vm0 = vmmov 0   ;;  %v207_v1 = vld [vmem:[#allocation5] sm:$0xff]   ;;  %v208_v2 = vld [vmem:[#allocation5 + $0x8] sm:$0xff]  }
  0x29   :  { %189 = vmatprep.subr.bf16.mxu0 %v323_v0  ;;  %193 = vmatprep.mubr.msk.bf16.mxu0 %vm324_vm0, %v323_v0  ;;  %v47_v3 = vld [vmem:[#allocation2] sm:$0xff]  ;;  %v48_v4 = vld [vmem:[#allocation2 + $0x8] sm:$0xff]  ;;  %vm73_vm1 = vcmask 261120   ;;  %s326_s18 = smov [#allocation7]  }
  0x2a   :  { %190 = vmatpush3.bf16.msra.mxu0 %v207_v1  ;;  %v49_v5 = vpack.c.bf16 %v48_v4, %v47_v3  ;;  %v182_v6 = vld [vmem:[%s421_s2] ss:$0 sm:$0xff]  ;;  %s325_s2 = smov [#allocation8]   ;;  %s153_s19 = sshll.u32 %s326_s18, 4  ;;  %s382_s19 = int_to_ptr.vmem [resolvable:$true] %s153_s19 }
  0x2b   :  { %191 = vmatprep.subr.bf16.mxu0 %v323_v0  ;;  %s165_s17 = sshll.u32 %s325_s2, 4  ;;  %s166_s17 = int_to_ptr.vmem [resolvable:$true] %s165_s17 }
  0x2c   :  { %s265_s20 = scalar_lea.vmem %s166_s17, 256  ;;  %p270_p3 = scmp.lt.s32.totalorder %s166_s17, %s166_s17 }
  0x2d   :  { %p266_p2 = scmp.ne.s32.totalorder %s166_s17, %s265_s20  ;;  %p271_p4 = scmp.lt.s32.totalorder %s265_s20, %s265_s20 }
  0x2e   :  { %192 = vmatpush3.bf16.msra.mxu0 %v208_v2 }
  0x2f   :  { %p272_p5 = por %p271_p4, %p270_p3 }
  0x31   :  { %194 = vmatmul.mubr.msk.bf16.vlgmr.msra.gmra.mrb[0].mxu0 %vm73_vm1, %v49_v5  ;;  %p273_p6 = pnand %p272_p5, %p266_p2 }
 0x104   :  { %v111_v7 = vpop.f32.mrb[0].mxu0 }
 0x105   :  { %v112_v8 = vadd.f32 %v182_v6, %v111_v7  ;;  %v195_v9 = vpop.f32.mrb[1].mxu0 }
 0x106   :  { %v114_v10 = vpop.f32.mrb[2].mxu0 }
 0x107   :  { %118 = vmax.xlane.f32.xlu0 %v112_v8  ;;  %v196_v11 = vpop.f32.mrb[3].mxu0  ;;  %v115_v12 = vadd.f32 %v182_v6, %v114_v10 }
 0x10b   :  { %120 = vmax.xlane.f32.xlu0 %v115_v12 }
 0x194   :  { %v119_v13 = vpop.xlane.xlu0 %118 }
 0x195   :  { %v122_v14 = vsub.f32 %v112_v8, %v119_v13 }
 0x197   :  { %v124_v15 = vmul.f32 1.442695, %v122_v14 }
 0x198   :  { %v121_v16 = vpop.xlane.xlu0 %120 }
 0x199   :  { %209 = vpow2.f32 %v124_v15  ;;  %v123_v17 = vsub.f32 %v115_v12, %v121_v16 }
 0x19b   :  { %v126_v18 = vmul.f32 1.442695, %v123_v17 }
 0x19d   :  { %211 = vpow2.f32 %v126_v18 }
 0x1a3   :  { %v210_v19 = vpop.eup %209 }
 0x1a4   :  { %128 = vadd.xlane.f32.xlu1 %v210_v19 }
 0x1a7   :  { %v212_v20 = vpop.eup %211 }
 0x1a8   :  { %130 = vadd.xlane.f32.xlu1 %v212_v20 }
 0x231   :  { %v129_v21 = vpop.xlane.xlu1 %128 }
 0x232   :  { %213 = vlog2.f32 %v129_v21 }
 0x233   :  { %215 = vrcp.f32 %v129_v21 }
 0x235   :  { %v131_v22 = vpop.xlane.xlu1 %130 }
 0x236   :  { %217 = vlog2.f32 %v131_v22 }
 0x237   :  { %219 = vrcp.f32 %v131_v22 }
 0x23c   :  { %v214_v23 = vpop.eup %213 }
 0x23d   :  { %v216_v24 = vpop.eup %215  ;;  %v133_v25 = vmul.f32 0.6931472, %v214_v23 }
 0x23e   :  { %v144_v26 = vmul.f32 %v216_v24, %v210_v19 }
 0x23f   :  { %v136_v27 = vsub.f32 %v122_v14, %v133_v25 }
 0x240   :  { %v218_v28 = vpop.eup %217  ;;  %146 = vst [vmem:[#allocation8] sm:$0xff] %v144_v26 }
 0x241   :  { %v220_v29 = vpop.eup %219  ;;  %v135_v30 = vmul.f32 0.6931472, %v218_v28  ;;  %138 = vst [vmem:[#allocation7] sm:$0xff] %v136_v27 }
 0x242   :  { %v145_v31 = vmul.f32 %v220_v29, %v212_v20 }
 0x243   :  { %v137_v32 = vsub.f32 %v123_v17, %v135_v30 }
 0x244   :  { %147 = vst [vmem:[#allocation8 + $0x8] sm:$0xff] %v145_v31 }
 0x245   :  { %139 = vst [vmem:[#allocation7 + $0x8] sm:$0xff] %v137_v32 }
 0x246   :  { %276 = shalt.err (!%p273_p6)
}
 0x247   :  { %s277_s23 = scalar_lea.hbm %s423_s4, 256 }
 0x248   :  { %p278_p7 = scmp.ne.s32.totalorder %s423_s4, %s277_s23  ;;  %p281_p8 = scmp.lt.u32.totalorder %s277_s23, %s423_s4 }
 0x24a   :  { %p283_p9 = pnand %p281_p8, %p278_p7 }
 0x24c   :  { %286 = shalt.err (!%p283_p9)
}
 0x24d   :  { %171 = dma.vmem_to_hbm [thread:$0]  %s166_s17, 256, %s423_s4, [#allocation9], %s318_s25, %s318_s25, %s319_s26  }
 0x24e   :  { %s287_s6 = scalar_lea.vmem %s382_s19, 256  ;;  %p292_p11 = scmp.lt.s32.totalorder %s382_s19, %s382_s19 }
 0x24f   :  { %p288_p10 = scmp.ne.s32.totalorder %s382_s19, %s287_s6  ;;  %p293_p12 = scmp.lt.s32.totalorder %s287_s6, %s287_s6 }
 0x251   :  { %p294_p13 = por %p293_p12, %p292_p11 }
 0x253   :  { %p295_p0 = pnand %p294_p13, %p288_p10 }
 0x255   :  { %298 = shalt.err (!%p295_p0)
}
 0x256   :  { %s299_s9 = scalar_lea.hbm %s422_s3, 256 }
 0x257   :  { %p300_p1 = scmp.ne.s32.totalorder %s422_s3, %s299_s9  ;;  %p303_p2 = scmp.lt.u32.totalorder %s299_s9, %s422_s3 }
 0x259   :  { %p305_p3 = pnand %p303_p2, %p300_p1 }
 0x25b   :  { %308 = shalt.err (!%p305_p3)
}
 0x25c   :  { %159 = dma.vmem_to_hbm [thread:$0]  %s382_s19, 256, %s422_s3, [#allocation4], %s318_s25, %s318_s25, %s319_s26  }
 0x25d   :  { %313 = dma.done.wait [#allocation4], 256  }
 0x25e   :  { %314 = vsyncadd [#allocation4], 4294967040 }
 0x25f   :  { %315 = dma.done.wait [#allocation9], 256  }
 0x260   :  { %316 = vsyncadd [#allocation9], 4294967040 }
 0x261   :  { %178 = vsyncpa [#allocation3], 1 }
 0x262   :  { %179 = vsyncpa [#allocation6], 1 }
 0x263   :  { %180 = vsyncpa [#allocation4], 1 }
 0x264   :  { %181 = vsyncpa [#allocation9], 1 }

</bundles_post_ra>
